<compile_context>
chip_gen: v7x
topology: tpu7x:2x2x1
jax: 0.10.0
libtpu: 0.0.40
codegen_flags: <defaults>
</compile_context>

<pallas_src>
import functools
import math

import jax
import jax.numpy as jnp
from jax.experimental import pallas as pl
from jax.experimental.pallas import tpu as pltpu


def _round_up(x, m):
    return ((x + m - 1) // m) * m


# ----------------------------------------------------------------------------
# Kernel 1: fused weight generation, tiled over D.
#   w_dr[tile]  = sum_b alpha_scaled[b] * A_t[tile, :, b]   (VPU mul + XLU lane reduce)
#   w_pre[tile] = w_dr[tile] @ B                            (MXU, f32 accumulate)
# A_t is the frozen A buffer pre-transposed to (D, rank, num_basis) (basis on
# lanes) and stored in bf16; it is upcast to f32 in VMEM (hidden under DMA).
# ----------------------------------------------------------------------------
def _weight_gen_kernel(alpha_ref, a_ref, b_ref, o_ref):
    a = a_ref[...].astype(jnp.float32)                 # (td, rank, nb)
    w_dr = jnp.sum(a * alpha_ref[...], axis=-1)        # (td, rank) f32
    o_ref[...] = jnp.dot(
        w_dr, b_ref[...], preferred_element_type=jnp.float32
    ).astype(o_ref.dtype)


def generate_weight_core(alpha_scaled, a_t, b, *, tile_d=256,
                         out_dtype=jnp.bfloat16):
    """alpha_scaled: (1,1,nb) f32 (scale folded in); a_t: (D, rank, nb) bf16;
    b: (rank, d) f32  ->  (D, d) out_dtype."""
    D, rank, nb = a_t.shape
    d = b.shape[1]

    # Pick a D tile: multiple of 16 (bf16 sublane packing for the output) and
    # small enough that the double-buffered A_t block stays within a few MiB
    # even at num_basis=10000 (the module default).
    bytes_per_row = rank * nb * a_t.dtype.itemsize
    td_budget = max(16, ((8 * 1024 * 1024) // max(bytes_per_row, 1)) // 16 * 16)
    D_pad = _round_up(D, 16)
    td = min(tile_d, D_pad, td_budget)
    td = max(16, td // 16 * 16)
    D_total = _round_up(D_pad, td)
    if D_total != D:
        a_t = jnp.pad(a_t, ((0, D_total - D), (0, 0), (0, 0)))
    grid_d = D_total // td

    w = pl.pallas_call(
        _weight_gen_kernel,
        out_shape=jax.ShapeDtypeStruct((D_total, d), out_dtype),
        grid_spec=pltpu.PrefetchScalarGridSpec(
            num_scalar_prefetch=0,
            grid=(grid_d,),
            in_specs=[
                pl.BlockSpec((1, 1, nb), lambda i: (0, 0, 0)),     # alpha (resident)
                pl.BlockSpec((td, rank, nb), lambda i: (i, 0, 0)),  # A_t tile
                pl.BlockSpec((rank, d), lambda i: (0, 0)),          # B (resident)
            ],
            out_specs=pl.BlockSpec((td, d), lambda i: (i, 0)),
        ),
        compiler_params=pltpu.CompilerParams(
            dimension_semantics=("parallel",)
        ),
    )(alpha_scaled, a_t, b)
    return w[:D] if D_total != D else w


# ----------------------------------------------------------------------------
# Kernel 2: x @ weight, tiled over M with the weight resident across M tiles.
#   - x stays f32 in HBM; the f32->bf16 cast happens in VMEM (under the DMA).
#   - bf16 weight single-buffered (grid-invariant block), f32 MXU accumulation.
#   - bf16 output (store-bound at small K: halves vst + HBM writeback).
#   - M padded to a 16-aligned multiple of the tile => full, unmasked stores.
#   - M axis "parallel" (v7x megacore sharding).
# ----------------------------------------------------------------------------
def _xw_kernel(x_ref, w_ref, o_ref):
    x = x_ref[...].astype(w_ref.dtype)      # f32 -> bf16 in VMEM
    o_ref[...] = jnp.dot(
        x, w_ref[...], preferred_element_type=jnp.float32
    ).astype(o_ref.dtype)


def matmul_xw(x2d, weight, *, tile_m=1024, compute_dtype=jnp.bfloat16):
    M, K = x2d.shape
    K2, Np = weight.shape
    assert K == K2, (x2d.shape, weight.shape)

    weight = weight.astype(compute_dtype)   # no-op when weight is already bf16

    # bf16 output sublane tile is (16,128): pad rows to 16, then up to a full
    # tile multiple so every output tile is full (no masked partial stores).
    m_pad = _round_up(M, 16)
    tm = min(tile_m, m_pad)
    m_total = _round_up(m_pad, tm)
    if m_total != M:
        x2d = jnp.pad(x2d, ((0, m_total - M), (0, 0)))
    grid_m = m_total // tm

    itemsize = jnp.dtype(x2d.dtype).itemsize
    cost = pl.CostEstimate(
        flops=2 * m_total * K * Np,
        transcendentals=0,
        bytes_accessed=m_total * K * itemsize + K * Np * 2 + m_total * Np * 2,
    )

    y = pl.pallas_call(
        _xw_kernel,
        out_shape=jax.ShapeDtypeStruct((m_total, Np), compute_dtype),
        grid_spec=pltpu.PrefetchScalarGridSpec(
            num_scalar_prefetch=0,
            grid=(grid_m,),
            in_specs=[
                pl.BlockSpec((tm, K), lambda i: (i, 0)),
                # Grid-invariant weight: single buffer (saves K*Np*2 B VMEM).
                pl.BlockSpec((K, Np), lambda i: (0, 0),
                             pipeline_mode=pl.Buffered(1)),
            ],
            out_specs=pl.BlockSpec((tm, Np), lambda i: (i, 0)),
        ),
        compiler_params=pltpu.CompilerParams(
            dimension_semantics=("parallel",)
        ),
        cost_estimate=cost,
    )(x2d, weight)
    if m_total != M:
        y = y[:M]
    return y


# ----------------------------------------------------------------------------
# Parameter init (deterministic, mirrors the module's __init__ shapes).
# ----------------------------------------------------------------------------
def init_nola(key, in_features, out_features, num_basis):
    N = in_features * out_features
    rank = 16
    d = 128
    assert N % d == 0, "in_features * out_features must be a multiple of 128"
    D = N // d
    scale = 10.0 * (1.0 / rank) * (1.0 / num_basis)

    k_a, k_b, k_alpha, k_perm = jax.random.split(key, 4)
    # kaiming_uniform_(a=sqrt(5)) -> bound = 1/sqrt(fan_in)
    bound_A = 1.0 / math.sqrt(D * rank)
    bound_B = 1.0 / math.sqrt(rank)
    A = jax.random.uniform(k_a, (num_basis, D, rank), jnp.float32, -bound_A, bound_A)
    B = jax.random.uniform(k_b, (rank, d), jnp.float32, -bound_B, bound_B)
    # NOTE: PyTorch initializes alpha to zeros (output would be all-zero); use
    # small deterministic random values so the synthetic kernel is non-trivial.
    alpha = jax.random.uniform(k_alpha, (num_basis,), jnp.float32, -1.0, 1.0)
    perm = jax.random.permutation(k_perm, N)

    # A is a frozen buffer -> store the kernel-friendly layout once at init:
    # (D, rank, num_basis) puts the basis reduction on the lane axis; bf16
    # halves the HBM read of the A-read-bound weight generation.
    A_t = jnp.transpose(A, (1, 2, 0)).astype(jnp.bfloat16)

    return dict(
        A=A, A_t=A_t, B=B, alpha=alpha, perm=perm, scale=scale,
        in_features=in_features, out_features=out_features,
        num_basis=num_basis, D=D, d=d, rank=rank, N=N,
    )


# ----------------------------------------------------------------------------
# Forward pass.
# ----------------------------------------------------------------------------
def nola_make_weight(p, *, tile_d=256, compute_dtype=jnp.bfloat16):
    """Generate the (in_f, out_padded) weight in compute_dtype.  If
    alpha/A/B are fixed at inference time, call this once and cache it."""
    nb = p["num_basis"]
    # Fold `scale` into alpha (data, not a kernel closure constant).
    alpha_scaled = (p["scale"] * p["alpha"]).astype(jnp.float32).reshape(1, 1, nb)

    # Fused, D-tiled Pallas kernel: alpha-reduction + (w_dr @ B), bf16 out.
    w_pre = generate_weight_core(
        alpha_scaled, p["A_t"], p["B"], tile_d=tile_d, out_dtype=compute_dtype
    )  # (D, d)

    # TODO(synk): the arbitrary flat-index permutation gather has no robust
    # Pallas/Mosaic lowering (general dynamic gather across >128 lanes); it
    # only touches N elements, so it stays in plain XLA between the kernels.
    weight = w_pre.reshape(p["N"])[p["perm"]].reshape(
        p["in_features"], p["out_features"]
    )

    # Lane-dense weight: pad out_features up to a multiple of 128 so the big
    # matmul's stores are unmasked full-lane vst (slice back outside).
    out_p = _round_up(p["out_features"], 128)
    if out_p != p["out_features"]:
        weight = jnp.pad(weight, ((0, 0), (0, out_p - p["out_features"])))
    return weight


def nola_forward(x, p, *, tile_m=1024, tile_d=256, compute_dtype=jnp.bfloat16):
    weight = nola_make_weight(p, tile_d=tile_d, compute_dtype=compute_dtype)
    lead = x.shape[:-1]
    x2d = x.reshape(-1, p["in_features"])
    y = matmul_xw(x2d, weight, tile_m=tile_m, compute_dtype=compute_dtype)
    if weight.shape[1] != p["out_features"]:
        y = y[:, : p["out_features"]]
    return y.reshape(*lead, p["out_features"])


def nola_reference(x, p):
    w_dr = jnp.einsum("b,bdr->dr", p["alpha"], p["A"])
    w_pre = p["scale"] * (w_dr @ p["B"])
    weight = w_pre.reshape(p["N"])[p["perm"]].reshape(
        p["in_features"], p["out_features"]
    )
    return x @ weight


if __name__ == "__main__":
    key = jax.random.PRNGKey(0)
    k_param, k_x = jax.random.split(key)

    in_features, out_features, num_basis = 32, 64, 256
    params = init_nola(k_param, in_features, out_features, num_basis)

    x = jax.random.normal(k_x, (2, 8, in_features), jnp.float32)

    fwd = jax.jit(lambda xx: nola_forward(xx, params))
    y = jax.block_until_ready(fwd(x))

    y_ref = nola_reference(x, params)
    assert y.shape == (2, 8, out_features), y.shape

    # End-to-end bf16 (A_t, weight, x cast, output) vs f32 reference: allow a
    # 2% relative + small absolute tolerance.
    y_f32 = y.astype(jnp.float32)
    err = float(jnp.max(jnp.abs(y_f32 - y_ref)))
    ref_mag = float(jnp.max(jnp.abs(y_ref))) + 1e-12
    assert err <= 2e-2 * ref_mag + 1e-5, (err, ref_mag)
    print("KERNEL_OK")
</pallas_src>

<mosaic_0001>
module attributes {stable_mosaic.version = 11 : i64} {
  func.func private @main(%arg0: i32) attributes {dimension_semantics = [#tpu.dimension_semantics<core_parallel>], iteration_bounds = array<i64: 2>, tpu.core_type = #tpu.core_type<sc_scalar_subcore>, window_params = []} {
    return
  }
}

module attributes {stable_mosaic.version = 11 : i64} {
  func.func private @main(%arg0: i32) attributes {dimension_semantics = [#tpu.dimension_semantics<core_parallel>], iteration_bounds = array<i64: 2>, tpu.core_type = #tpu.core_type<sc_scalar_subcore>, window_params = []} {
    return
  }
}

module attributes {stable_mosaic.version = 11 : i64} {
  func.func @_weight_gen_kernel(%arg0: i32, %arg1: memref<1x1x256xf32, #tpu.memory_space<vmem>>, %arg2: memref<16x16x256xbf16, #tpu.memory_space<vmem>>, %arg3: memref<16x128xf32, #tpu.memory_space<vmem>>, %arg4: memref<16x128xbf16, #tpu.memory_space<vmem>>) attributes {dimension_semantics = [#tpu.dimension_semantics<parallel>], iteration_bounds = array<i64: 1>, scalar_prefetch = 0 : i64, scratch_operands = 0 : i64, tpu.core_type = #tpu.core_type<tc>, window_params = [{pipeline_mode = #tpu.pipeline_mode<synchronous>, transform_indices = @transform_0, window_bounds = array<i64: 1, 1, 256>}, {transform_indices = @transform_1, window_bounds = array<i64: 16, 16, 256>}, {pipeline_mode = #tpu.pipeline_mode<synchronous>, transform_indices = @transform_2, window_bounds = array<i64: 16, 128>}, {transform_indices = @transform_3, window_bounds = array<i64: 16, 128>}]} {
    %c0 = arith.constant 0 : index
    %c0_0 = arith.constant 0 : index
    %c0_1 = arith.constant 0 : index
    %0 = vector.load %arg2[%c0, %c0_0, %c0_1] : memref<16x16x256xbf16, #tpu.memory_space<vmem>>, vector<16x16x256xbf16>
    %1 = arith.extf %0 : vector<16x16x256xbf16> to vector<16x16x256xf32>
    %c0_2 = arith.constant 0 : index
    %c0_3 = arith.constant 0 : index
    %c0_4 = arith.constant 0 : index
    %2 = vector.load %arg1[%c0_2, %c0_3, %c0_4] : memref<1x1x256xf32, #tpu.memory_space<vmem>>, vector<1x1x256xf32>
    %3 = vector.broadcast %2 : vector<1x1x256xf32> to vector<16x16x256xf32>
    %4 = arith.mulf %1, %3 : vector<16x16x256xf32>
    %cst = arith.constant dense<0.000000e+00> : vector<16x16xf32>
    %5 = vector.multi_reduction <add>, %4, %cst [2] : vector<16x16x256xf32> to vector<16x16xf32>
    %c0_5 = arith.constant 0 : index
    %c0_6 = arith.constant 0 : index
    %6 = vector.load %arg3[%c0_5, %c0_6] : memref<16x128xf32, #tpu.memory_space<vmem>>, vector<16x128xf32>
    %cst_7 = arith.constant dense<0.000000e+00> : vector<16x128xf32>
    %7 = tpu.matmul %5, %6, %cst_7 {dimension_numbers = #tpu.dot_dimension_numbers<[1], [0], [0], [1], [0, 0, 1, 1], [], []>} : vector<16x16xf32>, vector<16x128xf32>, vector<16x128xf32> -> vector<16x128xf32>
    %8 = arith.truncf %7 : vector<16x128xf32> to vector<16x128xbf16>
    %c0_8 = arith.constant 0 : index
    %c0_9 = arith.constant 0 : index
    %9 = vector.load %arg4[%c0_8, %c0_9] : memref<16x128xbf16, #tpu.memory_space<vmem>>, vector<16x128xbf16>
    tpu.vector_store %arg4[%c0_8, %c0_9], %8 {strides = array<i32>} : memref<16x128xbf16, #tpu.memory_space<vmem>>, vector<16x128xbf16>,
    return
  }
  func.func @transform_0(%arg0: i32) -> (i32, i32, i32) {
    %c0_i32 = arith.constant 0 : i32
    %c0_i32_0 = arith.constant 0 : i32
    %c0_i32_1 = arith.constant 0 : i32
    %c0_i32_2 = arith.constant 0 : i32
    return %c0_i32, %c0_i32_0, %c0_i32_1 : i32, i32, i32
  }
  func.func @transform_1(%arg0: i32) -> (i32, i32, i32) {
    %c0_i32 = arith.constant 0 : i32
    %c0_i32_0 = arith.constant 0 : i32
    %c0_i32_1 = arith.constant 0 : i32
    return %arg0, %c0_i32, %c0_i32_0 : i32, i32, i32
  }
  func.func @transform_2(%arg0: i32) -> (i32, i32) {
    %c0_i32 = arith.constant 0 : i32
    %c0_i32_0 = arith.constant 0 : i32
    %c0_i32_1 = arith.constant 0 : i32
    return %c0_i32, %c0_i32_0 : i32, i32
  }
  func.func @transform_3(%arg0: i32) -> (i32, i32) {
    %c0_i32 = arith.constant 0 : i32
    %c0_i32_0 = arith.constant 0 : i32
    return %arg0, %c0_i32 : i32, i32
  }
}

module attributes {stable_mosaic.version = 11 : i64} {
  func.func @_xw_kernel(%arg0: i32, %arg1: memref<16x32xf32, #tpu.memory_space<vmem>>, %arg2: memref<32x128xbf16, #tpu.memory_space<vmem>>, %arg3: memref<16x128xbf16, #tpu.memory_space<vmem>>) attributes {dimension_semantics = [#tpu.dimension_semantics<parallel>], iteration_bounds = array<i64: 1>, scalar_prefetch = 0 : i64, scratch_operands = 0 : i64, tpu.core_type = #tpu.core_type<tc>, window_params = [{transform_indices = @transform_0, window_bounds = array<i64: 16, 32>}, {pipeline_mode = #tpu.pipeline_mode<synchronous>, transform_indices = @transform_1, window_bounds = array<i64: 32, 128>}, {transform_indices = @transform_2, window_bounds = array<i64: 16, 128>}]} {
    %c0 = arith.constant 0 : index
    %c0_0 = arith.constant 0 : index
    %0 = vector.load %arg1[%c0, %c0_0] : memref<16x32xf32, #tpu.memory_space<vmem>>, vector<16x32xf32>
    %1 = arith.truncf %0 : vector<16x32xf32> to vector<16x32xbf16>
    %c0_1 = arith.constant 0 : index
    %c0_2 = arith.constant 0 : index
    %2 = vector.load %arg2[%c0_1, %c0_2] : memref<32x128xbf16, #tpu.memory_space<vmem>>, vector<32x128xbf16>
    %cst = arith.constant dense<0.000000e+00> : vector<16x128xf32>
    %3 = tpu.matmul %1, %2, %cst {dimension_numbers = #tpu.dot_dimension_numbers<[1], [0], [0], [1], [0, 0, 1, 1], [], []>} : vector<16x32xbf16>, vector<32x128xbf16>, vector<16x128xf32> -> vector<16x128xf32>
    %4 = arith.truncf %3 : vector<16x128xf32> to vector<16x128xbf16>
    %c0_3 = arith.constant 0 : index
    %c0_4 = arith.constant 0 : index
    %5 = vector.load %arg3[%c0_3, %c0_4] : memref<16x128xbf16, #tpu.memory_space<vmem>>, vector<16x128xbf16>
    tpu.vector_store %arg3[%c0_3, %c0_4], %4 {strides = array<i32>} : memref<16x128xbf16, #tpu.memory_space<vmem>>, vector<16x128xbf16>,
    return
  }
  func.func @transform_0(%arg0: i32) -> (i32, i32) {
    %c0_i32 = arith.constant 0 : i32
    %c0_i32_0 = arith.constant 0 : i32
    return %arg0, %c0_i32 : i32, i32
  }
  func.func @transform_1(%arg0: i32) -> (i32, i32) {
    %c0_i32 = arith.constant 0 : i32
    %c0_i32_0 = arith.constant 0 : i32
    %c0_i32_1 = arith.constant 0 : i32
    return %c0_i32, %c0_i32_0 : i32, i32
  }
  func.func @transform_2(%arg0: i32) -> (i32, i32) {
    %c0_i32 = arith.constant 0 : i32
    %c0_i32_0 = arith.constant 0 : i32
    return %arg0, %c0_i32 : i32, i32
  }
}

</mosaic_0001>

<bundles_post_ra>
// kernel: _lambda_.3
= control target key start
LH: loop header
LB: loop body
LE: loop exit
PB: predicated region body
PF: predicated region fallthrough
CT: control target
= control target key end

     0   :  { %v117_v0 = vmov 0.0   ;;  %vm118_vm0 = vmmov 0   ;;  %vm31_vm1 = vcmask 261120   ;;  %s149_s1 = inlined_call_operand.vmem [shape: bf16[32,128], index: 1, kind: input, shape index: {}]   ;;  %s150_s0 = inlined_call_operand.vmem [shape: f32[16,32], index: 0, kind: input, shape index: {}]   ;;  %s151_s2 = inlined_call_operand.vmem [shape: bf16[16,128], index: 2, kind: output, shape index: {}]  }
   0x1   :  { %105 = vmatprep.subr.bf16.mxu0 %v117_v0  ;;  %v115_v1 = vld [vmem:[%s149_s1] sm:$0xff]   ;;  %109 = vmatprep.mubr.msk.bf16.mxu0 %vm118_vm0, %v117_v0  ;;  %v116_v2 = vld [vmem:[%s149_s1 + $0x8] sm:$0xff]  }
   0x2   :  { %106 = vmatpush3.bf16.msra.mxu0 %v115_v1  ;;  %v12_v3 = vld [vmem:[%s150_s0] sm:$0xff]  ;;  %v13_v4 = vld [vmem:[%s150_s0 + $0x8] sm:$0xff] }
   0x3   :  { %107 = vmatprep.subr.bf16.mxu0 %v117_v0  ;;  %v14_v5 = vpack.c.bf16 %v13_v4, %v12_v3 }
   0x6   :  { %108 = vmatpush3.bf16.msra.mxu0 %v116_v2 }
   0x9   :  { %110 = vmatmul.mubr.msk.bf16.vlgmr.msra.gmra.mrb[0].mxu0 %vm31_vm1, %v14_v5 }
  0xdc   :  { %v69_v6 = vpop.f32.mrb[0].mxu0 }
  0xdd   :  { %v111_v7 = vpop.f32.mrb[1].mxu0 }
  0xde   :  { %v72_v8 = vpop.f32.mrb[2].mxu0 }
  0xdf   :  { %v100_v9 = vpack.c.bf16 %v72_v8, %v69_v6  ;;  %v112_v10 = vpop.f32.mrb[3].mxu0 }
  0xe1   :  { %101 = vst [vmem:[%s151_s2] sm:$0xff] %v100_v9  }

// kernel: _lambda_.2
= control target key start
LH: loop header
LB: loop body
LE: loop exit
PB: predicated region body
PF: predicated region fallthrough
CT: control target
= control target key end

     0   :  { %v113_v1 = vlaneseq  ;;  %s929_s0 = inlined_call_operand.vmem [shape: f32[1,1,256], index: 0, kind: input, shape index: {}]   ;;  %s930_s1 = inlined_call_operand.vmem [shape: bf16[16,16,256], index: 1, kind: input, shape index: {}]   ;;  %s931_s2 = inlined_call_operand.vmem [shape: f32[16,128], index: 2, kind: input, shape index: {}]   ;;  %s932_s3 = inlined_call_operand.hbm [shape: bf16[16,128], index: 3, kind: output, shape index: {}]  }
   0x1   :  { %v17_v0 = vld [vmem:[%s930_s1 + $0x10] sm:$0xff]  ;;  %v15_v2 = vld [vmem:[%s930_s1] sm:$0xff]  ;;  %v18_v4 = vld [vmem:[%s930_s1 + $0x18] sm:$0xff] }
   0x2   :  { %v675_v3 = vshrl.u32 %v113_v1, 7  ;;  %v16_v5 = vld [vmem:[%s930_s1 + $0x8] sm:$0xff]  ;;  %v51_v6 = vunpack.c.l.bf16 %v17_v0  ;;  %v52_v7 = vunpack.c.h.bf16 %v17_v0  ;;  %v111_v8 = vld [vmem:[%s929_s0] sm:$0x3]  ;;  %v47_v11 = vunpack.c.l.bf16 %v15_v2  ;;  %v34_v43 = vld [vmem:[%s930_s1 + $0x98] sm:$0xff] }
   0x3   :  { %v48_v12 = vunpack.c.h.bf16 %v15_v2  ;;  %v20_v13 = vld [vmem:[%s930_s1 + $0x28] sm:$0xff]  ;;  %v19_v14 = vld [vmem:[%s930_s1 + $0x20] sm:$0xff]  ;;  %v53_v15 = vunpack.c.l.bf16 %v18_v4  ;;  %v54_v16 = vunpack.c.h.bf16 %v18_v4  ;;  %v49_v17 = vunpack.c.l.bf16 %v16_v5 }
   0x4   :  { %v115_v9 = vsub.s32 0, %v675_v3  ;;  %v119_v10 = vsub.s32 1, %v675_v3  ;;  %v50_v18 = vunpack.c.h.bf16 %v16_v5  ;;  %v57_v21 = vunpack.c.l.bf16 %v20_v13  ;;  %v32_v25 = vld [vmem:[%s930_s1 + $0x88] sm:$0xff]  ;;  %v31_v30 = vld [vmem:[%s930_s1 + $0x80] sm:$0xff] }
   0x5   :  { %v58_v22 = vunpack.c.h.bf16 %v20_v13  ;;  %v55_v23 = vunpack.c.l.bf16 %v19_v14  ;;  %v56_v24 = vunpack.c.h.bf16 %v19_v14  ;;  %v81_v37 = vunpack.c.l.bf16 %v32_v25 }
   0x6   :  { %v694_v19 = vrot.slane %v111_v8, %v115_v9  ;;  %v696_v20 = vrot.slane %v111_v8, %v119_v10  ;;  %v82_v38 = vunpack.c.h.bf16 %v32_v25  ;;  %v79_v42 = vunpack.c.l.bf16 %v31_v30 }
   0x8   :  { %v127_v26 = vmul.f32 %v694_v19, %v51_v6  ;;  %v128_v27 = vmul.f32 %v696_v20, %v52_v7  ;;  %v123_v28 = vmul.f32 %v694_v19, %v47_v11  ;;  %v124_v29 = vmul.f32 %v696_v20, %v48_v12 }
   0x9   :  { %v129_v31 = vmul.f32 %v694_v19, %v53_v15  ;;  %v130_v32 = vmul.f32 %v696_v20, %v54_v16  ;;  %v125_v33 = vmul.f32 %v694_v19, %v49_v17  ;;  %v126_v34 = vmul.f32 %v696_v20, %v50_v18 }
   0xa   :  { %v193_v35 = vadd.f32 %v128_v27, %v127_v26  ;;  %v187_v36 = vadd.f32 %v124_v29, %v123_v28  ;;  %v133_v40 = vmul.f32 %v694_v19, %v57_v21  ;;  %v134_v41 = vmul.f32 %v696_v20, %v58_v22 }
   0xb   :  { %v196_v39 = vadd.f32 %v130_v32, %v129_v31 }
   0xc   :  { %8 = vsyncpa [#allocation3], 0  ;;  %194 = vadd.xlane.f32.xlu1 %v193_v35  ;;  %188 = vadd.xlane.f32.xlu0 %v187_v36  ;;  %v190_v44 = vadd.f32 %v126_v34, %v125_v33  ;;  %v131_v45 = vmul.f32 %v694_v19, %v55_v23  ;;  %v132_v46 = vmul.f32 %v696_v20, %v56_v24  ;;  %v80_v47 = vunpack.c.h.bf16 %v31_v30  ;;  %v33_v48 = vld [vmem:[%s930_s1 + $0x90] sm:$0xff]  ;;  %v22_v55 = vld [vmem:[%s930_s1 + $0x38] sm:$0xff] }
   0xd   :  { %v85_v49 = vunpack.c.l.bf16 %v34_v43  ;;  %v86_v50 = vunpack.c.h.bf16 %v34_v43  ;;  %v202_v51 = vadd.f32 %v134_v41, %v133_v40  ;;  %v157_v52 = vmul.f32 %v694_v19, %v81_v37  ;;  %v21_v56 = vld [vmem:[%s930_s1 + $0x30] sm:$0xff]  ;;  %v36_v9 = vld [vmem:[%s930_s1 + $0xa8] sm:$0xff]  ;;  %v35_v10 = vld [vmem:[%s930_s1 + $0xa0] sm:$0xff] }
   0xe   :  { %v158_v53 = vmul.f32 %v696_v20, %v82_v38  ;;  %v83_v54 = vunpack.c.l.bf16 %v33_v48  ;;  %v199_v57 = vadd.f32 %v132_v46, %v131_v45  ;;  %v155_v58 = vmul.f32 %v694_v19, %v79_v42  ;;  %v24_v17 = vld [vmem:[%s930_s1 + $0x48] sm:$0xff]  ;;  %v23_v24 = vld [vmem:[%s930_s1 + $0x40] sm:$0xff]  ;;  %v38_v32 = vld [vmem:[%s930_s1 + $0xb8] sm:$0xff] }
   0xf   :  { %v156_v59 = vmul.f32 %v696_v20, %v80_v47  ;;  %v84_v60 = vunpack.c.h.bf16 %v33_v48  ;;  %v61_v61 = vunpack.c.l.bf16 %v22_v55  ;;  %v62_v62 = vunpack.c.h.bf16 %v22_v55  ;;  %v37_v36 = vld [vmem:[%s930_s1 + $0xb0] sm:$0xff]  ;;  %v26_v47 = vld [vmem:[%s930_s1 + $0x58] sm:$0xff]  ;;  %v40_v55 = vld [vmem:[%s930_s1 + $0xc8] sm:$0xff] }
  0x10   :  { %197 = vadd.xlane.f32.xlu1 %v196_v39  ;;  %191 = vadd.xlane.f32.xlu0 %v190_v44  ;;  %v59_v63 = vunpack.c.l.bf16 %v21_v56  ;;  %v238_v0 = vadd.f32 %v158_v53, %v157_v52  ;;  %v161_v2 = vmul.f32 %v694_v19, %v85_v49  ;;  %v162_v4 = vmul.f32 %v696_v20, %v86_v50  ;;  %v25_v48 = vld [vmem:[%s930_s1 + $0x50] sm:$0xff] }
  0x11   :  { %v60_v5 = vunpack.c.h.bf16 %v21_v56  ;;  %v235_v6 = vadd.f32 %v156_v59, %v155_v58  ;;  %v159_v7 = vmul.f32 %v694_v19, %v83_v54  ;;  %v160_v8 = vmul.f32 %v696_v20, %v84_v60  ;;  %v39_v56 = vld [vmem:[%s930_s1 + $0xc0] sm:$0xff] }
  0x12   :  { %v137_v11 = vmul.f32 %v694_v19, %v61_v61  ;;  %v138_v12 = vmul.f32 %v696_v20, %v62_v62  ;;  %v244_v13 = vadd.f32 %v162_v4, %v161_v2  ;;  %v135_v14 = vmul.f32 %v694_v19, %v59_v63 }
  0x13   :  { %v136_v15 = vmul.f32 %v696_v20, %v60_v5  ;;  %v89_v16 = vunpack.c.l.bf16 %v36_v9  ;;  %v241_v18 = vadd.f32 %v160_v8, %v159_v7  ;;  %v90_v21 = vunpack.c.h.bf16 %v36_v9 }
  0x14   :  { %203 = vadd.xlane.f32.xlu1 %v202_v51  ;;  %200 = vadd.xlane.f32.xlu0 %v199_v57  ;;  %v87_v22 = vunpack.c.l.bf16 %v35_v10  ;;  %v88_v23 = vunpack.c.h.bf16 %v35_v10  ;;  %v208_v25 = vadd.f32 %v138_v12, %v137_v11  ;;  %v65_v26 = vunpack.c.l.bf16 %v24_v17  ;;  %v27_v10 = vld [vmem:[%s930_s1 + $0x60] sm:$0xff] }
  0x15   :  { %v66_v27 = vunpack.c.h.bf16 %v24_v17  ;;  %v205_v28 = vadd.f32 %v136_v15, %v135_v14  ;;  %v165_v29 = vmul.f32 %v694_v19, %v89_v16  ;;  %v63_v30 = vunpack.c.l.bf16 %v23_v24 }
  0x16   :  { %v64_v31 = vunpack.c.h.bf16 %v23_v24  ;;  %v166_v33 = vmul.f32 %v696_v20, %v90_v21  ;;  %v163_v34 = vmul.f32 %v694_v19, %v87_v22  ;;  %v164_v35 = vmul.f32 %v696_v20, %v88_v23 }
  0x17   :  { %v141_v37 = vmul.f32 %v694_v19, %v65_v26  ;;  %v142_v38 = vmul.f32 %v696_v20, %v66_v27  ;;  %v93_v39 = vunpack.c.l.bf16 %v38_v32  ;;  %v139_v40 = vmul.f32 %v694_v19, %v63_v30  ;;  %v41_v26 = vld [vmem:[%s930_s1 + $0xd0] sm:$0xff] }
  0x18   :  { %239 = vadd.xlane.f32.xlu1 %v238_v0  ;;  %236 = vadd.xlane.f32.xlu0 %v235_v6  ;;  %v140_v41 = vmul.f32 %v696_v20, %v64_v31  ;;  %v94_v42 = vunpack.c.h.bf16 %v38_v32  ;;  %v250_v43 = vadd.f32 %v166_v33, %v165_v29  ;;  %v247_v44 = vadd.f32 %v164_v35, %v163_v34  ;;  %v28_v6 = vld [vmem:[%s930_s1 + $0x68] sm:$0xff]  ;;  %v30_v34 = vld [vmem:[%s930_s1 + $0x78] sm:$0xff] }
  0x19   :  { %v91_v45 = vunpack.c.l.bf16 %v37_v36  ;;  %v92_v46 = vunpack.c.h.bf16 %v37_v36  ;;  %v214_v49 = vadd.f32 %v142_v38, %v141_v37  ;;  %v169_v50 = vmul.f32 %v694_v19, %v93_v39  ;;  %v29_v38 = vld [vmem:[%s930_s1 + $0x70] sm:$0xff] }
  0x1a   :  { %v211_v51 = vadd.f32 %v140_v41, %v139_v40  ;;  %v170_v52 = vmul.f32 %v696_v20, %v94_v42  ;;  %v69_v53 = vunpack.c.l.bf16 %v26_v47  ;;  %v70_v54 = vunpack.c.h.bf16 %v26_v47 }
  0x1b   :  { %v167_v57 = vmul.f32 %v694_v19, %v91_v45  ;;  %v168_v58 = vmul.f32 %v696_v20, %v92_v46  ;;  %v67_v59 = vunpack.c.l.bf16 %v25_v48  ;;  %v68_v60 = vunpack.c.h.bf16 %v25_v48  ;;  %v44_v46 = vld [vmem:[%s930_s1 + $0xe8] sm:$0xff] }
  0x1c   :  { %245 = vadd.xlane.f32.xlu1 %v244_v13  ;;  %242 = vadd.xlane.f32.xlu0 %v241_v18  ;;  %v97_v61 = vunpack.c.l.bf16 %v40_v55  ;;  %v98_v62 = vunpack.c.h.bf16 %v40_v55  ;;  %v95_v63 = vunpack.c.l.bf16 %v39_v56  ;;  %v256_v0 = vadd.f32 %v170_v52, %v169_v50  ;;  %v42_v18 = vld [vmem:[%s930_s1 + $0xd8] sm:$0xff]  ;;  %v43_v50 = vld [vmem:[%s930_s1 + $0xe0] sm:$0xff] }
  0x1d   :  { %v145_v2 = vmul.f32 %v694_v19, %v69_v53  ;;  %v146_v4 = vmul.f32 %v696_v20, %v70_v54  ;;  %v96_v5 = vunpack.c.h.bf16 %v39_v56  ;;  %v253_v7 = vadd.f32 %v168_v58, %v167_v57 }
  0x1e   :  { %v143_v8 = vmul.f32 %v694_v19, %v67_v59  ;;  %v144_v9 = vmul.f32 %v696_v20, %v68_v60  ;;  %v318_v11 = vand.u32 127, %v113_v1  ;;  %v173_v12 = vmul.f32 %v694_v19, %v97_v61  ;;  %v46_v61 = vld [vmem:[%s930_s1 + $0xf8] sm:$0xff] }
  0x1f   :  { %v174_v13 = vmul.f32 %v696_v20, %v98_v62  ;;  %v171_v14 = vmul.f32 %v694_v19, %v95_v63  ;;  %v73_v15 = vunpack.c.l.bf16 %v28_v6  ;;  %v172_v16 = vmul.f32 %v696_v20, %v96_v5  ;;  %v45_v62 = vld [vmem:[%s930_s1 + $0xf0] sm:$0xff] }
  0x20   :  { %209 = vadd.xlane.f32.xlu1 %v208_v25  ;;  %206 = vadd.xlane.f32.xlu0 %v205_v28  ;;  %v74_v17 = vunpack.c.h.bf16 %v28_v6  ;;  %v801_v21 = vsub.s32 %v318_v11, %v675_v3  ;;  %v323_v22 = vadd.s32 4294967288, %v318_v11  ;;  %v220_v1 = vadd.f32 %v146_v4, %v145_v2 }
  0x21   :  { %v217_v23 = vadd.f32 %v144_v9, %v143_v8  ;;  %v71_v24 = vunpack.c.l.bf16 %v27_v10  ;;  %v72_v25 = vunpack.c.h.bf16 %v27_v10  ;;  %v262_v28 = vadd.f32 %v174_v13, %v173_v12 }
  0x22   :  { %v807_v27 = vsub.s32 %v323_v22, %v675_v3  ;;  %v101_v29 = vunpack.c.l.bf16 %v42_v18  ;;  %v259_v30 = vadd.f32 %v172_v16, %v171_v14  ;;  %v149_v31 = vmul.f32 %v694_v19, %v73_v15  ;;  %v283_v22 = vld [vmem:[%s931_s2] sm:$0xff] }
  0x23   :  { %v150_v32 = vmul.f32 %v696_v20, %v74_v17  ;;  %v102_v33 = vunpack.c.h.bf16 %v42_v18  ;;  %v147_v35 = vmul.f32 %v694_v19, %v71_v24  ;;  %v148_v36 = vmul.f32 %v696_v20, %v72_v25 }
  0x24   :  { %251 = vadd.xlane.f32.xlu1 %v250_v43  ;;  %248 = vadd.xlane.f32.xlu0 %v247_v44  ;;  %v99_v3 = vunpack.c.l.bf16 %v41_v26  ;;  %v100_v37 = vunpack.c.h.bf16 %v41_v26  ;;  %v177_v39 = vmul.f32 %v694_v19, %v101_v29  ;;  %v77_v40 = vunpack.c.l.bf16 %v30_v34 }
  0x25   :  { %v78_v41 = vunpack.c.h.bf16 %v30_v34  ;;  %v226_v42 = vadd.f32 %v150_v32, %v149_v31  ;;  %v178_v43 = vmul.f32 %v696_v20, %v102_v33  ;;  %v75_v44 = vunpack.c.l.bf16 %v29_v38 }
  0x26   :  { %v76_v45 = vunpack.c.h.bf16 %v29_v38  ;;  %v223_v47 = vadd.f32 %v148_v36, %v147_v35  ;;  %v175_v48 = vmul.f32 %v694_v19, %v99_v3  ;;  %v105_v53 = vunpack.c.l.bf16 %v44_v46 }
  0x27   :  { %v154_v52 = vmul.f32 %v696_v20, %v78_v41  ;;  %v151_v54 = vmul.f32 %v694_v19, %v75_v44  ;;  %v106_v56 = vunpack.c.h.bf16 %v44_v46  ;;  %v268_v57 = vadd.f32 %v178_v43, %v177_v39 }
  0x28   :  { %215 = vadd.xlane.f32.xlu1 %v214_v49  ;;  %212 = vadd.xlane.f32.xlu0 %v211_v51  ;;  %v176_v49 = vmul.f32 %v696_v20, %v100_v37  ;;  %v153_v51 = vmul.f32 %v694_v19, %v77_v40  ;;  %v152_v55 = vmul.f32 %v696_v20, %v76_v45  ;;  %v103_v59 = vunpack.c.l.bf16 %v43_v50 }
  0x29   :  { %v104_v60 = vunpack.c.h.bf16 %v43_v50  ;;  %v182_v4 = vmul.f32 %v696_v20, %v106_v56  ;;  %v109_v5 = vunpack.c.l.bf16 %v46_v61  ;;  %v110_v6 = vunpack.c.h.bf16 %v46_v61 }
  0x2a   :  { %v265_v58 = vadd.f32 %v176_v49, %v175_v48  ;;  %v232_v63 = vadd.f32 %v154_v52, %v153_v51  ;;  %v229_v2 = vadd.f32 %v152_v55, %v151_v54  ;;  %v107_v9 = vunpack.c.l.bf16 %v45_v62 }
  0x2b   :  { %v180_v8 = vmul.f32 %v696_v20, %v104_v60  ;;  %v108_v10 = vunpack.c.h.bf16 %v45_v62  ;;  %v185_v12 = vmul.f32 %v694_v19, %v109_v5  ;;  %v186_v13 = vmul.f32 %v696_v20, %v110_v6 }
  0x2c   :  { %257 = vadd.xlane.f32.xlu1 %v256_v0  ;;  %254 = vadd.xlane.f32.xlu0 %v253_v7  ;;  %v181_v0 = vmul.f32 %v694_v19, %v105_v53  ;;  %v179_v7 = vmul.f32 %v694_v19, %v103_v59  ;;  %v183_v15 = vmul.f32 %v694_v19, %v107_v9  ;;  %vm328_vm0 = vcmask 130112  }
  0x2d   :  { %v184_v16 = vmul.f32 %v696_v20, %v108_v10  ;;  %v280_v17 = vadd.f32 %v186_v13, %v185_v12  ;;  %vm465_vm1 = vcmask 1041409   ;;  %vm467_vm2 = vcmask 1042434  }
  0x2e   :  { %v274_v11 = vadd.f32 %v182_v4, %v181_v0  ;;  %v271_v14 = vadd.f32 %v180_v8, %v179_v7  ;;  %vm469_vm3 = vcmask 1043459   ;;  %vm471_vm4 = vcmask 1044484  }
  0x2f   :  { %v277_v18 = vadd.f32 %v184_v16, %v183_v15  ;;  %vm473_vm5 = vcmask 1045509   ;;  %vm475_vm6 = vcmask 1046534   ;;  %vm477_vm7 = vcmask 1047559  }
  0x30   :  { %221 = vadd.xlane.f32.xlu1 %v220_v1  ;;  %218 = vadd.xlane.f32.xlu0 %v217_v23  ;;  %v284_v1 = vld [vmem:[%s931_s2 + $0x8] sm:$0xff]  ;;  %vm486_vm8 = vcmask 130048   ;;  %s645_s2 = smov [#allocation2]  }
  0x31   :  { %v614_v23 = vpack.c.bf16 %v284_v1, %v283_v22  ;;  %s581_s25 = sshll.u32 %s645_s2, 4  ;;  %s582_s25 = int_to_ptr.vmem [resolvable:$true] %s581_s25 }
  0x32   :  { %s621_s0 = scalar_lea.vmem %s582_s25, 128  ;;  %p626_p1 = scmp.lt.s32.totalorder %s582_s25, %s582_s25 }
  0x33   :  { %615 = vmatprep.subr.bf16.mxu0 %v614_v23  ;;  %p622_p0 = scmp.ne.s32.totalorder %s582_s25, %s621_s0  ;;  %p627_p2 = scmp.lt.s32.totalorder %s621_s0, %s621_s0 }
  0x34   :  { %263 = vadd.xlane.f32.xlu1 %v262_v28  ;;  %260 = vadd.xlane.f32.xlu0 %v259_v30 }
  0x35   :  { %617 = vmatpush3.bf16.msra.mxu0 %v614_v23  ;;  %p628_p3 = por %p627_p2, %p626_p1 }
  0x37   :  { %p629_p4 = pnand %p628_p3, %p622_p0 }
  0x38   :  { %227 = vadd.xlane.f32.xlu1 %v226_v42  ;;  %224 = vadd.xlane.f32.xlu0 %v223_v47 }
  0x3c   :  { %269 = vadd.xlane.f32.xlu1 %v268_v57  ;;  %266 = vadd.xlane.f32.xlu0 %v265_v58 }
  0x40   :  { %233 = vadd.xlane.f32.xlu1 %v232_v63  ;;  %230 = vadd.xlane.f32.xlu0 %v229_v2 }
  0x44   :  { %275 = vadd.xlane.f32.xlu1 %v274_v11  ;;  %272 = vadd.xlane.f32.xlu0 %v271_v14 }
  0x48   :  { %281 = vadd.xlane.f32.xlu1 %v280_v17  ;;  %278 = vadd.xlane.f32.xlu0 %v277_v18 }
  0x99   :  { %v195_v19 = vpop.xlane.xlu1 %194  ;;  %v189_v24 = vpop.xlane.xlu0 %188 }
  0x9a   :  { %v333_v26 = vrot.slane %v195_v19, %v801_v21  ;;  %v322_v28 = vrot.slane %v189_v24, %v801_v21 }
  0x9d   :  { %v198_v20 = vpop.xlane.xlu1 %197  ;;  %v192_v25 = vpop.xlane.xlu0 %191 }
  0x9e   :  { %v337_v29 = vrot.slane %v198_v20, %v807_v27  ;;  %v327_v30 = vrot.slane %v192_v25, %v807_v27 }
  0xa0   :  { %v338_v31 = vsel %vm328_vm0, %v337_v29, %v333_v26  ;;  %v329_v32 = vsel %vm328_vm0, %v327_v30, %v322_v28 }
  0xa1   :  { %v466_v33 = vsel %vm465_vm1, %v338_v31, %v329_v32  ;;  %v204_v34 = vpop.xlane.xlu1 %203  ;;  %v201_v35 = vpop.xlane.xlu0 %200 }
  0xa2   :  { %v346_v36 = vrot.slane %v204_v34, %v807_v27  ;;  %v342_v3 = vrot.slane %v201_v35, %v801_v21 }
  0xa4   :  { %v347_v37 = vsel %vm328_vm0, %v346_v36, %v342_v3 }
  0xa5   :  { %v468_v38 = vsel %vm467_vm2, %v347_v37, %v466_v33  ;;  %v240_v39 = vpop.xlane.xlu1 %239  ;;  %v237_v40 = vpop.xlane.xlu0 %236 }
  0xa6   :  { %v400_v41 = vrot.slane %v240_v39, %v807_v27  ;;  %v396_v42 = vrot.slane %v237_v40, %v801_v21 }
  0xa8   :  { %v401_v43 = vsel %vm328_vm0, %v400_v41, %v396_v42 }
  0xa9   :  { %v246_v44 = vpop.xlane.xlu1 %245  ;;  %v243_v45 = vpop.xlane.xlu0 %242 }
  0xaa   :  { %v409_v46 = vrot.slane %v246_v44, %v807_v27  ;;  %v405_v47 = vrot.slane %v243_v45, %v801_v21 }
  0xac   :  { %v410_v48 = vsel %vm328_vm0, %v409_v46, %v405_v47 }
  0xad   :  { %v479_v49 = vsel %vm465_vm1, %v410_v48, %v401_v43  ;;  %v210_v50 = vpop.xlane.xlu1 %209  ;;  %v207_v51 = vpop.xlane.xlu0 %206 }
  0xae   :  { %v355_v52 = vrot.slane %v210_v50, %v807_v27  ;;  %v351_v53 = vrot.slane %v207_v51, %v801_v21 }
  0xb0   :  { %v356_v54 = vsel %vm328_vm0, %v355_v52, %v351_v53 }
  0xb1   :  { %v470_v55 = vsel %vm469_vm3, %v356_v54, %v468_v38  ;;  %v252_v56 = vpop.xlane.xlu1 %251  ;;  %v249_v57 = vpop.xlane.xlu0 %248 }
  0xb2   :  { %v418_v58 = vrot.slane %v252_v56, %v807_v27  ;;  %v414_v59 = vrot.slane %v249_v57, %v801_v21 }
  0xb4   :  { %v419_v60 = vsel %vm328_vm0, %v418_v58, %v414_v59 }
  0xb5   :  { %v480_v61 = vsel %vm467_vm2, %v419_v60, %v479_v49  ;;  %v216_v62 = vpop.xlane.xlu1 %215  ;;  %v213_v63 = vpop.xlane.xlu0 %212 }
  0xb6   :  { %v364_v0 = vrot.slane %v216_v62, %v807_v27  ;;  %v360_v2 = vrot.slane %v213_v63, %v801_v21 }
  0xb8   :  { %v365_v4 = vsel %vm328_vm0, %v364_v0, %v360_v2 }
  0xb9   :  { %v258_v5 = vpop.xlane.xlu1 %257  ;;  %v255_v6 = vpop.xlane.xlu0 %254  ;;  %v472_v7 = vsel %vm471_vm4, %v365_v4, %v470_v55 }
  0xba   :  { %v427_v8 = vrot.slane %v258_v5, %v807_v27  ;;  %v423_v9 = vrot.slane %v255_v6, %v801_v21 }
  0xbc   :  { %v428_v10 = vsel %vm328_vm0, %v427_v8, %v423_v9 }
  0xbd   :  { %v481_v11 = vsel %vm469_vm3, %v428_v10, %v480_v61  ;;  %v222_v12 = vpop.xlane.xlu1 %221  ;;  %v219_v13 = vpop.xlane.xlu0 %218 }
  0xbe   :  { %v373_v14 = vrot.slane %v222_v12, %v807_v27  ;;  %v369_v15 = vrot.slane %v219_v13, %v801_v21 }
  0xc0   :  { %v374_v16 = vsel %vm328_vm0, %v373_v14, %v369_v15 }
  0xc1   :  { %v264_v17 = vpop.xlane.xlu1 %263  ;;  %v261_v18 = vpop.xlane.xlu0 %260  ;;  %v474_v22 = vsel %vm473_vm5, %v374_v16, %v472_v7 }
  0xc2   :  { %v436_v1 = vrot.slane %v264_v17, %v807_v27  ;;  %v432_v23 = vrot.slane %v261_v18, %v801_v21 }
  0xc4   :  { %v437_v19 = vsel %vm328_vm0, %v436_v1, %v432_v23 }
  0xc5   :  { %v482_v24 = vsel %vm471_vm4, %v437_v19, %v481_v11  ;;  %v228_v20 = vpop.xlane.xlu1 %227  ;;  %v225_v25 = vpop.xlane.xlu0 %224 }
  0xc6   :  { %v382_v26 = vrot.slane %v228_v20, %v807_v27  ;;  %v378_v28 = vrot.slane %v225_v25, %v801_v21 }
  0xc8   :  { %v383_v29 = vsel %vm328_vm0, %v382_v26, %v378_v28 }
  0xc9   :  { %v270_v30 = vpop.xlane.xlu1 %269  ;;  %v267_v31 = vpop.xlane.xlu0 %266  ;;  %v476_v32 = vsel %vm475_vm6, %v383_v29, %v474_v22 }
  0xca   :  { %v445_v33 = vrot.slane %v270_v30, %v807_v27  ;;  %v441_v34 = vrot.slane %v267_v31, %v801_v21 }
  0xcc   :  { %v446_v35 = vsel %vm328_vm0, %v445_v33, %v441_v34 }
  0xcd   :  { %v483_v36 = vsel %vm473_vm5, %v446_v35, %v482_v24  ;;  %v234_v3 = vpop.xlane.xlu1 %233  ;;  %v231_v37 = vpop.xlane.xlu0 %230 }
  0xce   :  { %v391_v38 = vrot.slane %v234_v3, %v807_v27  ;;  %v387_v39 = vrot.slane %v231_v37, %v801_v21 }
  0xd0   :  { %v392_v40 = vsel %vm328_vm0, %v391_v38, %v387_v39 }
  0xd1   :  { %v276_v41 = vpop.xlane.xlu1 %275  ;;  %v273_v42 = vpop.xlane.xlu0 %272  ;;  %v478_v43 = vsel %vm477_vm7, %v392_v40, %v476_v32 }
  0xd2   :  { %v454_v44 = vrot.slane %v276_v41, %v807_v27  ;;  %v450_v45 = vrot.slane %v273_v42, %v801_v21  ;;  %611 = vmatprep.mubr.msk.f32.mxu0 %vm486_vm8, %v478_v43 }
  0xd4   :  { %v455_v46 = vsel %vm328_vm0, %v454_v44, %v450_v45 }
  0xd5   :  { %v282_v47 = vpop.xlane.xlu1 %281  ;;  %v279_v48 = vpop.xlane.xlu0 %278  ;;  %v484_v49 = vsel %vm475_vm6, %v455_v46, %v483_v36 }
  0xd6   :  { %v463_v50 = vrot.slane %v282_v47, %v807_v27  ;;  %v459_v51 = vrot.slane %v279_v48, %v801_v21 }
  0xd8   :  { %v464_v52 = vsel %vm328_vm0, %v463_v50, %v459_v51 }
  0xd9   :  { %v485_v53 = vsel %vm477_vm7, %v464_v52, %v484_v49 }
  0xda   :  { %612 = vmatmul.mubr.msk.f32.vlgmr.msra.gmra.mrb[0].mxu0 %vm486_vm8, %v485_v53 }
 0x1ad   :  { %v613_v54 = vpop.f32.mrb[0].mxu0 }
 0x1ae   :  { %v557_v55 = vpop.f32.mrb[1].mxu0 }
 0x1af   :  { %v601_v56 = vpack.c.bf16 %v613_v54, %v557_v55 }
 0x1b1   :  { %602 = vst [vmem:[#allocation2] sm:$0xff] %v601_v56  }
 0x1b2   :  { %632 = shalt.err (!%p629_p4)
}
 0x1b3   :  { %s633_s28 = scalar_lea.hbm %s932_s3, 128 }
 0x1b4   :  { %p634_p5 = scmp.ne.s32.totalorder %s932_s3, %s633_s28  ;;  %p637_p6 = scmp.lt.u32.totalorder %s633_s28, %s932_s3 }
 0x1b6   :  { %p639_p7 = pnand %p637_p6, %p634_p5 }
 0x1b8   :  { %642 = shalt.err (!%p639_p7)
}
 0x1b9   :  { %s646_s6 = smov 64   ;;  %s647_s7 = smov 4  }
 0x1ba   :  { %587 = dma.vmem_to_hbm [thread:$0]  %s582_s25, 128, %s932_s3, [#allocation3], %s646_s6, %s646_s6, %s647_s7  }
 0x1bb   :  { %643 = dma.done.wait [#allocation3], 128  }
 0x1bc   :  { %644 = vsyncadd [#allocation3], 4294967168 }
 0x1bd   :  { %591 = vsyncpa [#allocation3], 1 }

</bundles_post_ra>
